<compile_context>
chip_gen: v7x
topology: tpu7x:2x2x1
jax: 0.10.0
libtpu: 0.0.40
codegen_flags: <defaults>
</compile_context>

<pallas_src>
import functools

import jax
import jax.numpy as jnp
from jax.experimental import pallas as pl
from jax.experimental.pallas import tpu as pltpu


def _attention_kernel(h_ref, p_ref, feats_ref, mask_ref,
                      wh_ref, bh_ref, wa_ref, out_ref, *, approx_recip):
    # Per-grid-step (one batch tile of TB rows) shapes:
    #   h_ref:    (TB, R)  f32     p_ref:    (TB, A, H)  f32 or bf16
    #   feats_ref:(TB, A, R) f32/bf16        mask_ref: (TB, A) f32
    #   wh_ref:   (R, H)   pre-transposed h2att weight (f32)
    #   bh_ref:   (1, H)   wa_ref: (1, H)   (alpha_net weight; bias dropped)
    #   out_ref:  (TB, R)  f32

    # att_h = h2att(h) for the whole batch tile: one (TB,R)@(R,H) MXU matmul.
    att_h = jnp.dot(h_ref[...], wh_ref[...],
                    preferred_element_type=jnp.float32) + bh_ref[...]     # (TB, H)

    # dot = tanh(p_att_feats + att_h).  p may be streamed as bf16: the add with
    # the f32 att_h promotes to f32, so the tanh runs in f32 (safe on v5e,
    # which has no bf16 VPU/EUP).
    # TODO(synk): on v6e/v7x the add/tanh could stay bf16 to halve EUP pushes.
    dot = jnp.tanh(p_ref[...] + att_h[:, None, :])                        # (TB, A, H)

    # alpha_net without the N=1 matmul: VPU multiply + lane reduction over H.
    # (alpha bias omitted: constant across A, cancels in softmax.)
    scores = jnp.sum(dot * wa_ref[...], axis=-1)                          # (TB, A)

    # Fused masked softmax over the attention axis (A on lanes):
    #   w = (exp(s - max) * m) / sum(exp(s - max) * m)
    scores = scores - jnp.max(scores, axis=-1, keepdims=True)
    e = jnp.exp(scores) * mask_ref[...]                                   # (TB, A)
    denom = jnp.sum(e, axis=-1, keepdims=True)
    w = e * pl.reciprocal(denom, approx=approx_recip)                     # (TB, A)

    # Weighted sum of attention features via VPU multiply + sublane reduce:
    #   (TB, A, 1) * (TB, A, R) -> sum over A -> (TB, R), written lane-dense.
    # TODO(synk): for very large A this full-A temporary could be chunked with
    # a fori_loop accumulator to keep TB large without VMEM pressure.
    out_ref[...] = jnp.sum(w[:, :, None] * feats_ref[...],
                           axis=1).astype(out_ref.dtype)


def _physical_vmem_bytes():
    """Best-effort per-core physical VMEM size; conservative fallback = 64 MiB."""
    try:
        info = pltpu.get_tpu_info()
        for attr in ("vmem_capacity_bytes", "vmem_bytes", "vmem_size_bytes"):
            v = getattr(info, attr, None)
            if v:
                return int(v)
    except Exception:
        pass
    return 64 << 20  # v7x per-TC physical VMEM (the tightest generation)


def _pick_batch_tile(B, A, R, H, feat_bytes, vmem_budget, block_b=None):
    """Largest sublane-aligned batch tile that fits the VMEM budget."""
    if B <= 8:
        return B, B  # single step, full (small) batch

    # Constant VMEM: the (pipelined) weight / bias blocks.
    const_bytes = 2 * (R * H + 2 * H) * 4
    # Per batch-row: double-buffered feats/p blocks, small h/mask/out blocks,
    # and the in-kernel f32 temporaries (tanh tile, scores, broadcast product).
    per_row = (2 * A * (H + R) * feat_bytes        # p_att_feats + att_feats (x2 bufs)
               + 2 * (2 * R + A) * 4               # h, out, mask (x2 bufs)
               + A * (H + R) * 4 + 2 * A * 4 + H * 4)  # kernel temporaries
    tb_budget = max(8, (vmem_budget - const_bytes) // per_row)
    if block_b is not None:
        tb_budget = min(tb_budget, block_b)

    b8 = pl.cdiv(B, 8) * 8
    tb = int(min(tb_budget, b8))
    tb = max(8, (tb // 8) * 8)
    # Keep at least 2 grid steps when the batch allows it so v7x's two
    # TensorCores can split the "parallel" batch axis.
    if tb >= b8 and b8 >= 16:
        tb = max(8, ((b8 // 2) // 8) * 8)
    b_pad = pl.cdiv(B, tb) * tb
    return tb, b_pad


def attention_forward(h, att_feats, p_att_feats, params, att_masks=None,
                      feats_dtype=jnp.float32, approx_recip=False,
                      block_b=None, vmem_fraction=0.75):
    """Pallas equivalent of Attention.forward.

    feats_dtype=jnp.bfloat16 streams att_feats / p_att_feats at half the HBM
    bytes (compute stays f32 in-kernel); approx_recip=True uses the EUP vrcp
    for the softmax denominator.  Both relax exact-match precision slightly.
    """
    B, A, R = att_feats.shape
    H = p_att_feats.shape[-1]
    feat_bytes = jnp.dtype(feats_dtype).itemsize

    if att_masks is None:
        att_masks = jnp.ones((B, A), dtype=jnp.float32)

    vmem_budget = int(_physical_vmem_bytes() * vmem_fraction)
    TB, B_pad = _pick_batch_tile(B, A, R, H, feat_bytes, vmem_budget, block_b)

    def pad_b(x):
        if B_pad == B:
            return x
        pad_width = [(0, B_pad - B)] + [(0, 0)] * (x.ndim - 1)
        return jnp.pad(x, pad_width)

    h2 = pad_b(h.reshape(B, R).astype(jnp.float32))
    p3 = pad_b(p_att_feats.astype(feats_dtype))
    f3 = pad_b(att_feats.astype(feats_dtype))
    m2 = pad_b(att_masks.reshape(B, A).astype(jnp.float32))
    if B_pad != B:
        # Padded rows get an all-ones mask so the renormalization never sees a
        # zero denominator (their outputs are sliced off below anyway).
        m2 = m2.at[B:].set(1.0)

    # Pre-transposed h2att weight: (R, H) feeds the MXU directly (no per-step .T).
    wh_t = jnp.asarray(params["h2att_w"]).T.astype(jnp.float32)            # (R, H)
    bh = jnp.asarray(params["h2att_b"]).reshape(1, H).astype(jnp.float32)  # (1, H)
    wa = jnp.asarray(params["alpha_w"]).reshape(1, H).astype(jnp.float32)  # (1, H)
    # alpha_net bias intentionally not passed: softmax is shift-invariant.

    kernel = functools.partial(_attention_kernel, approx_recip=approx_recip)

    out = pl.pallas_call(
        kernel,
        out_shape=jax.ShapeDtypeStruct((B_pad, R), jnp.float32),
        grid=(B_pad // TB,),
        in_specs=[
            pl.BlockSpec((TB, R), lambda b: (b, 0)),        # h
            pl.BlockSpec((TB, A, H), lambda b: (b, 0, 0)),  # p_att_feats
            pl.BlockSpec((TB, A, R), lambda b: (b, 0, 0)),  # att_feats
            pl.BlockSpec((TB, A), lambda b: (b, 0)),        # att_masks
            # Constant-index weight blocks: Pallas elides the re-DMA across steps.
            pl.BlockSpec((R, H), lambda b: (0, 0)),         # h2att weight^T
            pl.BlockSpec((1, H), lambda b: (0, 0)),         # h2att bias
            pl.BlockSpec((1, H), lambda b: (0, 0)),         # alpha_net weight
        ],
        out_specs=pl.BlockSpec((TB, R), lambda b: (b, 0)),
        compiler_params=pltpu.CompilerParams(
            dimension_semantics=("parallel",),
            vmem_limit_bytes=vmem_budget),
    )(h2, p3, f3, m2, wh_t, bh, wa)

    return out[:B]


def _reference_forward(h, att_feats, p_att_feats, params, att_masks=None):
    """Pure-JAX reference mirroring the PyTorch forward exactly."""
    B, A, R = att_feats.shape
    H = p_att_feats.shape[-1]
    att_h = h @ params["h2att_w"].T + params["h2att_b"]                # (B, H)
    dot = jnp.tanh(p_att_feats + att_h[:, None, :])                    # (B, A, H)
    score = (dot.reshape(-1, H) @ params["alpha_w"].T
             + params["alpha_b"]).reshape(B, A)                        # (B, A)
    weight = jax.nn.softmax(score, axis=1)
    if att_masks is not None:
        weight = weight * att_masks.reshape(B, A).astype(jnp.float32)
        weight = weight / jnp.sum(weight, axis=1, keepdims=True)
    return jnp.einsum("ba,bar->br", weight, att_feats)


if __name__ == "__main__":
    # opt.rnn_size = 32, opt.att_hid_size = 32
    B, A, RNN, HID = 4, 16, 32, 32

    key = jax.random.PRNGKey(0)
    k = jax.random.split(key, 8)

    # Deterministic synthetic parameters (torch Linear shapes: (out, in), (out,))
    params = {
        "h2att_w": 0.1 * jax.random.normal(k[0], (HID, RNN), jnp.float32),
        "h2att_b": 0.1 * jax.random.normal(k[1], (HID,), jnp.float32),
        "alpha_w": 0.1 * jax.random.normal(k[2], (1, HID), jnp.float32),
        "alpha_b": 0.1 * jax.random.normal(k[3], (1,), jnp.float32),
    }

    h = jax.random.normal(k[4], (B, RNN), jnp.float32)
    att_feats = jax.random.normal(k[5], (B, A, RNN), jnp.float32)
    p_att_feats = jax.random.normal(k[6], (B, A, HID), jnp.float32)
    att_masks = (jnp.arange(A)[None, :] < jnp.array([[A], [A - 4], [A - 8], [A - 2]])
                 ).astype(jnp.float32)

    # --- exact path (f32 streaming, exact reciprocal) ---
    fwd = jax.jit(functools.partial(attention_forward, params=params))
    out = jax.block_until_ready(fwd(h, att_feats, p_att_feats, att_masks=att_masks))
    ref = _reference_forward(h, att_feats, p_att_feats, params, att_masks)
    assert out.shape == (B, RNN)
    assert jnp.allclose(out, ref, atol=1e-5, rtol=1e-5), (
        f"max abs err {jnp.max(jnp.abs(out - ref))}")

    # --- att_masks=None path ---
    out2 = jax.block_until_ready(
        jax.jit(functools.partial(attention_forward, params=params))(
            h, att_feats, p_att_feats))
    ref2 = _reference_forward(h, att_feats, p_att_feats, params, None)
    assert jnp.allclose(out2, ref2, atol=1e-5, rtol=1e-5)

    # --- tiled / padded batch path (B > 8 -> multi-step "parallel" grid) ---
    B2 = 20
    k2 = jax.random.split(jax.random.PRNGKey(1), 4)
    h_b = jax.random.normal(k2[0], (B2, RNN), jnp.float32)
    af_b = jax.random.normal(k2[1], (B2, A, RNN), jnp.float32)
    pf_b = jax.random.normal(k2[2], (B2, A, HID), jnp.float32)
    mask_b = (jax.random.uniform(k2[3], (B2, A)) < 0.8).astype(jnp.float32)
    mask_b = mask_b.at[:, 0].set(1.0)  # never all-zero
    out3 = jax.block_until_ready(
        jax.jit(functools.partial(attention_forward, params=params))(
            h_b, af_b, pf_b, att_masks=mask_b))
    ref3 = _reference_forward(h_b, af_b, pf_b, params, mask_b)
    assert out3.shape == (B2, RNN)
    assert jnp.allclose(out3, ref3, atol=1e-5, rtol=1e-5), (
        f"max abs err {jnp.max(jnp.abs(out3 - ref3))}")

    # --- fast path: bf16 feature streaming + approx softmax reciprocal ---
    fast = jax.jit(functools.partial(attention_forward, params=params,
                                     feats_dtype=jnp.bfloat16,
                                     approx_recip=True))
    out4 = jax.block_until_ready(fast(h_b, af_b, pf_b, att_masks=mask_b))
    assert out4.shape == (B2, RNN)
    assert jnp.allclose(out4, ref3, atol=5e-2, rtol=5e-2), (
        f"max abs err (bf16 path) {jnp.max(jnp.abs(out4 - ref3))}")

    print("KERNEL_OK")
</pallas_src>

<mosaic_0001>
module attributes {stable_mosaic.version = 11 : i64} {
  func.func @_attention_kernel(%arg0: i32, %arg1: memref<4x32xf32, #tpu.memory_space<vmem>>, %arg2: memref<4x16x32xf32, #tpu.memory_space<vmem>>, %arg3: memref<4x16x32xf32, #tpu.memory_space<vmem>>, %arg4: memref<4x16xf32, #tpu.memory_space<vmem>>, %arg5: memref<32x32xf32, #tpu.memory_space<vmem>>, %arg6: memref<1x32xf32, #tpu.memory_space<vmem>>, %arg7: memref<1x32xf32, #tpu.memory_space<vmem>>, %arg8: memref<4x32xf32, #tpu.memory_space<vmem>>) attributes {dimension_semantics = [#tpu.dimension_semantics<parallel>], iteration_bounds = array<i64: 1>, scalar_prefetch = 0 : i64, scratch_operands = 0 : i64, tpu.core_type = #tpu.core_type<tc>, window_params = [{transform_indices = @transform_0, window_bounds = array<i64: 4, 32>}, {transform_indices = @transform_1, window_bounds = array<i64: 4, 16, 32>}, {transform_indices = @transform_2, window_bounds = array<i64: 4, 16, 32>}, {transform_indices = @transform_3, window_bounds = array<i64: 4, 16>}, {pipeline_mode = #tpu.pipeline_mode<synchronous>, transform_indices = @transform_4, window_bounds = array<i64: 32, 32>}, {pipeline_mode = #tpu.pipeline_mode<synchronous>, transform_indices = @transform_5, window_bounds = array<i64: 1, 32>}, {pipeline_mode = #tpu.pipeline_mode<synchronous>, transform_indices = @transform_6, window_bounds = array<i64: 1, 32>}, {transform_indices = @transform_7, window_bounds = array<i64: 4, 32>}]} {
    %c0 = arith.constant 0 : index
    %c0_0 = arith.constant 0 : index
    %0 = vector.load %arg1[%c0, %c0_0] : memref<4x32xf32, #tpu.memory_space<vmem>>, vector<4x32xf32>
    %c0_1 = arith.constant 0 : index
    %c0_2 = arith.constant 0 : index
    %1 = vector.load %arg5[%c0_1, %c0_2] : memref<32x32xf32, #tpu.memory_space<vmem>>, vector<32x32xf32>
    %cst = arith.constant dense<0.000000e+00> : vector<4x32xf32>
    %2 = tpu.matmul %0, %1, %cst {dimension_numbers = #tpu.dot_dimension_numbers<[1], [0], [0], [1], [0, 0, 1, 1], [], []>} : vector<4x32xf32>, vector<32x32xf32>, vector<4x32xf32> -> vector<4x32xf32>
    %c0_3 = arith.constant 0 : index
    %c0_4 = arith.constant 0 : index
    %3 = vector.load %arg6[%c0_3, %c0_4] : memref<1x32xf32, #tpu.memory_space<vmem>>, vector<1x32xf32>
    %4 = vector.broadcast %3 : vector<1x32xf32> to vector<4x32xf32>
    %5 = arith.addf %2, %4 : vector<4x32xf32>
    %c0_5 = arith.constant 0 : index
    %c0_6 = arith.constant 0 : index
    %c0_7 = arith.constant 0 : index
    %6 = vector.load %arg2[%c0_5, %c0_6, %c0_7] : memref<4x16x32xf32, #tpu.memory_space<vmem>>, vector<4x16x32xf32>
    %7 = vector.shape_cast %5 : vector<4x32xf32> to vector<4x1x32xf32>
    %8 = vector.broadcast %7 : vector<4x1x32xf32> to vector<4x16x32xf32>
    %9 = arith.addf %6, %8 : vector<4x16x32xf32>
    %10 = math.tanh %9 : vector<4x16x32xf32>
    %c0_8 = arith.constant 0 : index
    %c0_9 = arith.constant 0 : index
    %11 = vector.load %arg7[%c0_8, %c0_9] : memref<1x32xf32, #tpu.memory_space<vmem>>, vector<1x32xf32>
    %12 = vector.shape_cast %11 : vector<1x32xf32> to vector<1x1x32xf32>
    %13 = vector.broadcast %12 : vector<1x1x32xf32> to vector<4x16x32xf32>
    %14 = arith.mulf %10, %13 : vector<4x16x32xf32>
    %cst_10 = arith.constant dense<0.000000e+00> : vector<4x16xf32>
    %15 = vector.multi_reduction <add>, %14, %cst_10 [2] : vector<4x16x32xf32> to vector<4x16xf32>
    %cst_11 = arith.constant dense<0xFF800000> : vector<4xf32>
    %16 = vector.multi_reduction <maximumf>, %15, %cst_11 [1] : vector<4x16xf32> to vector<4xf32>
    %17 = vector.shape_cast %16 : vector<4xf32> to vector<4x1xf32>
    %18 = vector.broadcast %17 : vector<4x1xf32> to vector<4x16xf32>
    %19 = arith.subf %15, %18 : vector<4x16xf32>
    %20 = math.exp %19 : vector<4x16xf32>
    %c0_12 = arith.constant 0 : index
    %c0_13 = arith.constant 0 : index
    %21 = vector.load %arg4[%c0_12, %c0_13] : memref<4x16xf32, #tpu.memory_space<vmem>>, vector<4x16xf32>
    %22 = arith.mulf %20, %21 : vector<4x16xf32>
    %cst_14 = arith.constant dense<0.000000e+00> : vector<4xf32>
    %23 = vector.multi_reduction <add>, %22, %cst_14 [1] : vector<4x16xf32> to vector<4xf32>
    %24 = vector.shape_cast %23 : vector<4xf32> to vector<4x1xf32>
    %25 = tpu.reciprocal %24 : vector<4x1xf32> -> vector<4x1xf32>
    %26 = vector.broadcast %25 : vector<4x1xf32> to vector<4x16xf32>
    %27 = arith.mulf %22, %26 : vector<4x16xf32>
    %28 = vector.shape_cast %27 : vector<4x16xf32> to vector<4x16x1xf32>
    %c0_15 = arith.constant 0 : index
    %c0_16 = arith.constant 0 : index
    %c0_17 = arith.constant 0 : index
    %29 = vector.load %arg3[%c0_15, %c0_16, %c0_17] : memref<4x16x32xf32, #tpu.memory_space<vmem>>, vector<4x16x32xf32>
    %30 = vector.broadcast %28 : vector<4x16x1xf32> to vector<4x16x32xf32>
    %31 = arith.mulf %30, %29 : vector<4x16x32xf32>
    %cst_18 = arith.constant dense<0.000000e+00> : vector<4x32xf32>
    %32 = vector.multi_reduction <add>, %31, %cst_18 [1] : vector<4x16x32xf32> to vector<4x32xf32>
    %c0_19 = arith.constant 0 : index
    %c0_20 = arith.constant 0 : index
    %33 = vector.load %arg8[%c0_19, %c0_20] : memref<4x32xf32, #tpu.memory_space<vmem>>, vector<4x32xf32>
    tpu.vector_store %arg8[%c0_19, %c0_20], %32 {strides = array<i32>} : memref<4x32xf32, #tpu.memory_space<vmem>>, vector<4x32xf32>,
    return
  }
  func.func @transform_0(%arg0: i32) -> (i32, i32) {
    %c0_i32 = arith.constant 0 : i32
    %c0_i32_0 = arith.constant 0 : i32
    return %arg0, %c0_i32 : i32, i32
  }
  func.func @transform_1(%arg0: i32) -> (i32, i32, i32) {
    %c0_i32 = arith.constant 0 : i32
    %c0_i32_0 = arith.constant 0 : i32
    %c0_i32_1 = arith.constant 0 : i32
    return %arg0, %c0_i32, %c0_i32_0 : i32, i32, i32
  }
  func.func @transform_2(%arg0: i32) -> (i32, i32, i32) {
    %c0_i32 = arith.constant 0 : i32
    %c0_i32_0 = arith.constant 0 : i32
    %c0_i32_1 = arith.constant 0 : i32
    return %arg0, %c0_i32, %c0_i32_0 : i32, i32, i32
  }
  func.func @transform_3(%arg0: i32) -> (i32, i32) {
    %c0_i32 = arith.constant 0 : i32
    %c0_i32_0 = arith.constant 0 : i32
    return %arg0, %c0_i32 : i32, i32
  }
  func.func @transform_4(%arg0: i32) -> (i32, i32) {
    %c0_i32 = arith.constant 0 : i32
    %c0_i32_0 = arith.constant 0 : i32
    %c0_i32_1 = arith.constant 0 : i32
    return %c0_i32, %c0_i32_0 : i32, i32
  }
  func.func @transform_5(%arg0: i32) -> (i32, i32) {
    %c0_i32 = arith.constant 0 : i32
    %c0_i32_0 = arith.constant 0 : i32
    %c0_i32_1 = arith.constant 0 : i32
    return %c0_i32, %c0_i32_0 : i32, i32
  }
  func.func @transform_6(%arg0: i32) -> (i32, i32) {
    %c0_i32 = arith.constant 0 : i32
    %c0_i32_0 = arith.constant 0 : i32
    %c0_i32_1 = arith.constant 0 : i32
    return %c0_i32, %c0_i32_0 : i32, i32
  }
  func.func @transform_7(%arg0: i32) -> (i32, i32) {
    %c0_i32 = arith.constant 0 : i32
    %c0_i32_0 = arith.constant 0 : i32
    return %arg0, %c0_i32 : i32, i32
  }
}

</mosaic_0001>

<bundles_post_ra>
// kernel: attention_forward.1
= control target key start
LH: loop header
LB: loop body
LE: loop exit
PB: predicated region body
PF: predicated region fallthrough
CT: control target
= control target key end

     0   :  { %12 = vsyncpa [#allocation3], 0  ;;  %s1076_s0 = inlined_call_operand.hbm [shape: f32[4,32], index: 0, kind: input, shape index: {}]   ;;  %s1077_s1 = inlined_call_operand.hbm [shape: f32[4,16,32], index: 1, kind: input, shape index: {}]   ;;  %s1078_s2 = inlined_call_operand.hbm [shape: f32[4,16,32], index: 2, kind: input, shape index: {}]   ;;  %s1079_s3 = inlined_call_operand.vmem [shape: f32[4,16], index: 3, kind: input, shape index: {}]   ;;  %s1080_s4 = inlined_call_operand.hbm [shape: f32[32,32], index: 4, kind: input, shape index: {}]   ;;  %s1081_s5 = inlined_call_operand.vmem [shape: f32[1,32], index: 5, kind: input, shape index: {}]   ;;  %s1082_s6 = inlined_call_operand.vmem [shape: f32[1,32], index: 6, kind: input, shape index: {}]   ;;  %s1083_s7 = inlined_call_operand.hbm [shape: f32[4,32], index: 7, kind: output, shape index: {}]  }
   0x1   :  { %13 = vsyncpa [#allocation6], 0 }
   0x2   :  { %14 = vsyncpa [#allocation9], 0 }
   0x3   :  { %15 = vsyncpa [#allocation4], 0  ;;  %s855_s24 = smov [#allocation5]   ;;  %s737_s28 = scalar_lea.hbm %s1077_s1, 1024 }
   0x4   :  { %s31_s25 = sshll.u32 %s855_s24, 4  ;;  %p738_p0 = scmp.ne.s32.totalorder %s1077_s1, %s737_s28  ;;  %s32_s25 = int_to_ptr.vmem [resolvable:$true] %s31_s25 }
   0x5   :  { %p741_p1 = scmp.lt.u32.totalorder %s737_s28, %s1077_s1 }
   0x7   :  { %p743_p2 = pnand %p741_p1, %p738_p0 }
   0x9   :  { %746 = shalt.err (!%p743_p2)
}
   0xa   :  { %s747_s10 = scalar_lea.vmem %s32_s25, 1024  ;;  %p752_p4 = scmp.lt.s32.totalorder %s32_s25, %s32_s25 }
   0xb   :  { %p748_p3 = scmp.ne.s32.totalorder %s32_s25, %s747_s10  ;;  %p753_p5 = scmp.lt.s32.totalorder %s747_s10, %s747_s10 }
   0xd   :  { %p754_p6 = por %p753_p5, %p752_p4 }
   0xf   :  { %p755_p7 = pnand %p754_p6, %p748_p3 }
  0x11   :  { %758 = shalt.err (!%p755_p7)
}
  0x12   :  { %s856_s11 = smov 128   ;;  %s857_s12 = smov 8  }
  0x13   :  { %37 = dma.hbm_to_vmem [thread:$0]  %s1077_s1, 1024, %s32_s25, [#allocation6], %s856_s11, %s856_s11, %s857_s12  }
  0x14   :  { %s858_s15 = smov [#allocation2]   ;;  %s859_s17 = smov [#allocation7]  }
  0x15   :  { %s22_s16 = sshll.u32 %s858_s15, 4  ;;  %s43_s18 = sshll.u32 %s859_s17, 4  ;;  %s23_s16 = int_to_ptr.vmem [resolvable:$true] %s22_s16  ;;  %s44_s18 = int_to_ptr.vmem [resolvable:$true] %s43_s18 }
  0x16   :  { %s759_s21 = scalar_lea.hbm %s1076_s0, 64 }
  0x17   :  { %p760_p8 = scmp.ne.s32.totalorder %s1076_s0, %s759_s21  ;;  %p763_p9 = scmp.lt.u32.totalorder %s759_s21, %s1076_s0 }
  0x19   :  { %p765_p10 = pnand %p763_p9, %p760_p8 }
  0x1b   :  { %768 = shalt.err (!%p765_p10)
}
  0x1c   :  { %s769_s1 = scalar_lea.vmem %s23_s16, 64  ;;  %p774_p12 = scmp.lt.s32.totalorder %s23_s16, %s23_s16 }
  0x1d   :  { %p770_p11 = scmp.ne.s32.totalorder %s23_s16, %s769_s1  ;;  %p775_p13 = scmp.lt.s32.totalorder %s769_s1, %s769_s1 }
  0x1f   :  { %p776_p0 = por %p775_p13, %p774_p12 }
  0x21   :  { %p777_p1 = pnand %p776_p0, %p770_p11 }
  0x23   :  { %780 = shalt.err (!%p777_p1)
}
  0x24   :  { %25 = dma.hbm_to_vmem [thread:$0]  %s1076_s0, 64, %s23_s16, [#allocation3]  }
  0x25   :  { %s781_s30 = scalar_lea.hbm %s1078_s2, 1024 }
  0x26   :  { %p782_p2 = scmp.ne.s32.totalorder %s1078_s2, %s781_s30  ;;  %p785_p3 = scmp.lt.u32.totalorder %s781_s30, %s1078_s2 }
  0x28   :  { %p787_p4 = pnand %p785_p3, %p782_p2 }
  0x2a   :  { %790 = shalt.err (!%p787_p4)
}
  0x2b   :  { %s791_s14 = scalar_lea.vmem %s44_s18, 1024  ;;  %p796_p6 = scmp.lt.s32.totalorder %s44_s18, %s44_s18 }
  0x2c   :  { %p792_p5 = scmp.ne.s32.totalorder %s44_s18, %s791_s14  ;;  %p797_p7 = scmp.lt.s32.totalorder %s791_s14, %s791_s14 }
  0x2e   :  { %p798_p8 = por %p797_p7, %p796_p6 }
  0x30   :  { %p799_p9 = pnand %p798_p8, %p792_p5 }
  0x32   :  { %802 = shalt.err (!%p799_p9)
}
  0x33   :  { %49 = dma.hbm_to_vmem [thread:$0]  %s1078_s2, 1024, %s44_s18, [#allocation6], %s856_s11, %s856_s11, %s857_s12  }
  0x34   :  { %s860_s16 = smov [#allocation8]   ;;  %s803_s21 = scalar_lea.hbm %s1080_s4, 512 }
  0x35   :  { %s57_s17 = sshll.u32 %s860_s16, 4  ;;  %p804_p10 = scmp.ne.s32.totalorder %s1080_s4, %s803_s21  ;;  %s58_s17 = int_to_ptr.vmem [resolvable:$true] %s57_s17 }
  0x36   :  { %p807_p11 = scmp.lt.u32.totalorder %s803_s21, %s1080_s4 }
  0x38   :  { %p809_p12 = pnand %p807_p11, %p804_p10 }
  0x3a   :  { %812 = shalt.err (!%p809_p12)
}
  0x3b   :  { %s813_s1 = scalar_lea.vmem %s58_s17, 512  ;;  %p818_p0 = scmp.lt.s32.totalorder %s58_s17, %s58_s17 }
  0x3c   :  { %p814_p13 = scmp.ne.s32.totalorder %s58_s17, %s813_s1  ;;  %p819_p1 = scmp.lt.s32.totalorder %s813_s1, %s813_s1 }
  0x3e   :  { %p820_p2 = por %p819_p1, %p818_p0 }
  0x40   :  { %p821_p3 = pnand %p820_p2, %p814_p13 }
  0x42   :  { %824 = shalt.err (!%p821_p3)
}
  0x43   :  { %63 = dma.hbm_to_vmem [thread:$0]  %s1080_s4, 512, %s58_s17, [#allocation9], %s856_s11, %s856_s11, %s857_s12  }
  0x44   :  { %847 = dma.done.wait [#allocation3], 64  }
  0x45   :  { %848 = vsyncadd [#allocation3], 4294967232 }
  0x46   :  { %849 = dma.done.wait [#allocation6], 2048  }
  0x47   :  { %850 = vsyncadd [#allocation6], 4294965248 }
  0x48   :  { %851 = dma.done.wait [#allocation9], 512  }
  0x49   :  { %852 = vsyncadd [#allocation9], 4294966784  ;;  %v861_v0 = vmov 0.0|0.0   ;;  %vm862_vm0 = vmmov 0   ;;  %v863_v1 = vmov 0.0   ;;  %v81_v2 = vld [vmem:[#allocation8] sm:$0xff]  ;;  %v178_v11 = vlaneseq }
  0x4a   :  { %683 = vmatprep.subr.bf16.mxu0 %v861_v0  ;;  %680 = vmatprep.mubr.msk.f32.mxu0 %vm862_vm0, %v863_v1  ;;  %v82_v3 = vld [vmem:[#allocation8 + $0x8] sm:$0xff]  ;;  %v83_v4 = vld [vmem:[#allocation8 + $0x10] sm:$0xff]  ;;  %v84_v6 = vld [vmem:[#allocation8 + $0x18] sm:$0xff]  ;;  %vm92_vm1 = vcmask 261120   ;;  %v864_v9 = vmov 1966171168  }
  0x4b   :  { %v684_v5 = vpack.c.bf16 %v82_v3, %v81_v2  ;;  %v687_v7 = vpack.c.bf16 %v84_v6, %v83_v4  ;;  %v80_v8 = vld [vmem:[#allocation2] sm:$0xf]  ;;  %v176_v10 = vunpack.c.l.s4 %v864_v9  ;;  %v966_v13 = vshrl.u32 %v178_v11, 7  ;;  %v166_v23 = vld [vmem:[#allocation5] sm:$0xff]  ;;  %v167_v24 = vld [vmem:[#allocation5 + $0x8] sm:$0xff] }
  0x4c   :  { %v664_v14 = vld [vmem:[%s1081_s5] ss:$0 sm:$0xff]  ;;  %v168_v28 = vld [vmem:[#allocation5 + $0x10] sm:$0xff]  ;;  %v170_v30 = vld [vmem:[#allocation5 + $0x20] sm:$0xff]  ;;  %vm293_vm2 = vcmask 130112   ;;  %vm322_vm3 = vcmask 1041409  }
  0x4d   :  { %685 = vmatpush3.bf16.msra.mxu0 %v684_v5  ;;  %v177_v12 = vunpack.c.0.s8 %v176_v10  ;;  %v973_v20 = vsub.s32 0, %v966_v13  ;;  %v169_v29 = vld [vmem:[#allocation5 + $0x18] sm:$0xff]  ;;  %v171_v36 = vld [vmem:[#allocation5 + $0x28] sm:$0xff]  ;;  %v172_v41 = vld [vmem:[#allocation5 + $0x30] sm:$0xff]  ;;  %v995_v9 = vsub.s32 1, %v966_v13  ;;  %vm324_vm4 = vcmask 1042434  }
  0x4e   :  { %686 = vmatprep.subr.bf16.mxu0 %v861_v0  ;;  %v173_v43 = vld [vmem:[#allocation5 + $0x38] sm:$0xff]  ;;  %vm326_vm5 = vcmask 1043459   ;;  %vm329_vm6 = vcmask 125952   ;;  %vm645_vm7 = vcmask 257024  }
  0x4f   :  { %v180_v15 = vsub.s32 %v177_v12, %v966_v13  ;;  %v666_v46 = vld [vmem:[%s1082_s6] ss:$0 sm:$0xff]  ;;  %v999_v12 = vsub.s32 2, %v966_v13 }
  0x51   :  { %688 = vmatpush3.bf16.msra.mxu0 %v687_v7  ;;  %v378_v7 = vld [vmem:[%s1079_s3] sm:$0xf]  ;;  %s866_s3 = smov [#allocation10]  }
  0x52   :  { %v394_v10 = vrot.slane %v378_v7, %v995_v9  ;;  %s653_s27 = sshll.u32 %s866_s3, 4  ;;  %s654_s27 = int_to_ptr.vmem [resolvable:$true] %s653_s27 }
  0x53   :  { %s825_s28 = scalar_lea.vmem %s654_s27, 64  ;;  %p830_p5 = scmp.lt.s32.totalorder %s654_s27, %s654_s27 }
  0x54   :  { %681 = vmatmul.mubr.msk.f32.vlgmr.msra.gmra.mrb[0].mxu0 %vm92_vm1, %v80_v8  ;;  %v383_v8 = vrot.slane %v378_v7, %v973_v20  ;;  %p826_p4 = scmp.ne.s32.totalorder %s654_s27, %s825_s28  ;;  %p831_p6 = scmp.lt.s32.totalorder %s825_s28, %s825_s28 }
  0x56   :  { %p832_p7 = por %p831_p6, %p830_p5 }
  0x58   :  { %p833_p8 = pnand %p832_p7, %p826_p4 }
 0x127   :  { %v162_v16 = vpop.f32.mrb[0].mxu0 }
 0x128   :  { %v163_v17 = vadd.f32 %v664_v14, %v162_v16  ;;  %v682_v18 = vpop.f32.mrb[1].mxu0  ;;  %v405_v14 = vrot.slane %v378_v7, %v999_v12 }
 0x129   :  { %v283_v18 = vand.u32 127, %v178_v11 }
 0x12a   :  { %v181_v19 = vrot.slane %v163_v17, %v180_v15 }
 0x12c   :  { %v182_v21 = vcombine.high %v181_v19, %v181_v19  ;;  %v189_v22 = vrot.slane %v181_v19, %v180_v15 }
 0x12e   :  { %v196_v25 = vrot.slane %v182_v21, %v180_v15  ;;  %v197_v26 = vcombine.high %v189_v22, %v189_v22  ;;  %v202_v27 = vrot.slane %v189_v22, %v973_v20  ;;  %v1003_v15 = vsub.s32 3, %v966_v13 }
 0x12f   :  { %v288_v21 = vadd.s32 4294967288, %v283_v18 }
 0x130   :  { %v198_v31 = vcombine.high %v196_v25, %v196_v25  ;;  %v206_v32 = vrot.slane %v196_v25, %v973_v20  ;;  %v210_v33 = vrot.slane %v197_v26, %v973_v20  ;;  %v219_v34 = vadd.f32 %v202_v27, %v166_v23 }
 0x131   :  { %v220_v35 = vadd.f32 %v202_v27, %v167_v24  ;;  %v416_v16 = vrot.slane %v378_v7, %v1003_v15  ;;  %v1008_v24 = vsub.s32 %v288_v21, %v966_v13  ;;  %v1011_v26 = vsub.s32 %v283_v18, %v966_v13 }
 0x132   :  { %v221_v37 = vadd.f32 %v206_v32, %v168_v28  ;;  %v222_v38 = vadd.f32 %v206_v32, %v169_v29  ;;  %v214_v39 = vrot.slane %v198_v31, %v973_v20  ;;  %v223_v40 = vadd.f32 %v210_v33, %v170_v30 }
 0x133   :  { %703 = vtanh.f32 %v219_v34  ;;  %v224_v42 = vadd.f32 %v210_v33, %v171_v36 }
 0x134   :  { %705 = vtanh.f32 %v220_v35  ;;  %v225_v44 = vadd.f32 %v214_v39, %v172_v41  ;;  %v226_v45 = vadd.f32 %v214_v39, %v173_v43 }
 0x135   :  { %707 = vtanh.f32 %v221_v37 }
 0x136   :  { %709 = vtanh.f32 %v222_v38 }
 0x137   :  { %711 = vtanh.f32 %v223_v40 }
 0x138   :  { %713 = vtanh.f32 %v224_v42 }
 0x139   :  { %715 = vtanh.f32 %v225_v44  ;;  %v865_v44 = vmov 0  }
 0x13a   :  { %717 = vtanh.f32 %v226_v45  ;;  %702 = vset.pattern.permute.xlu0 %v865_v44  ;;  %701 = vset.pattern.permute.xlu1 %v865_v44 }
 0x13d   :  { %v704_v47 = vpop.eup %703 }
 0x13e   :  { %v706_v48 = vpop.eup %705  ;;  %v242_v49 = vmul.f32 %v704_v47, %v666_v46 }
 0x13f   :  { %v708_v50 = vpop.eup %707  ;;  %v243_v54 = vmul.f32 %v706_v48, %v666_v46 }
 0x140   :  { %v710_v51 = vpop.eup %709  ;;  %v250_v52 = vsel %vm92_vm1, %v242_v49, 0.0  ;;  %v244_v53 = vmul.f32 %v708_v50, %v666_v46 }
 0x141   :  { %v712_v55 = vpop.eup %711  ;;  %251 = vadd.xlane.f32.xlu0 %v250_v52  ;;  %v245_v57 = vmul.f32 %v710_v51, %v666_v46  ;;  %v253_v59 = vsel %vm92_vm1, %v243_v54, 0.0 }
 0x142   :  { %v256_v56 = vsel %vm92_vm1, %v244_v53, 0.0  ;;  %v714_v58 = vpop.eup %713  ;;  %v246_v60 = vmul.f32 %v712_v55, %v666_v46 }
 0x143   :  { %257 = vadd.xlane.f32.xlu1 %v256_v56  ;;  %v716_v61 = vpop.eup %715  ;;  %v259_v62 = vsel %vm92_vm1, %v245_v57, 0.0  ;;  %v247_v63 = vmul.f32 %v714_v58, %v666_v46 }
 0x144   :  { %v718_v0 = vpop.eup %717  ;;  %v262_v1 = vsel %vm92_vm1, %v246_v60, 0.0  ;;  %v248_v2 = vmul.f32 %v716_v61, %v666_v46 }
 0x145   :  { %254 = vadd.xlane.f32.xlu0 %v253_v59  ;;  %v265_v3 = vsel %vm92_vm1, %v247_v63, 0.0  ;;  %v249_v4 = vmul.f32 %v718_v0, %v666_v46 }
 0x146   :  { %v268_v5 = vsel %vm92_vm1, %v248_v2, 0.0 }
 0x147   :  { %260 = vadd.xlane.f32.xlu1 %v259_v62  ;;  %v271_v6 = vsel %vm92_vm1, %v249_v4, 0.0 }
 0x149   :  { %263 = vadd.xlane.f32.xlu0 %v262_v1 }
 0x14b   :  { %266 = vadd.xlane.f32.xlu1 %v265_v3 }
 0x14d   :  { %269 = vadd.xlane.f32.xlu0 %v268_v5 }
 0x14f   :  { %272 = vadd.xlane.f32.xlu1 %v271_v6 }
 0x160   :  { %385 = vbcast.lane.b32.xlu1 %v383_v8, 256 }
 0x163   :  { %389 = vbcast.lane.b32.xlu0 %v383_v8, 264 }
 0x164   :  { %396 = vbcast.lane.b32.xlu1 %v394_v10, 256 }
 0x168   :  { %400 = vbcast.lane.b32.xlu1 %v394_v10, 264 }
 0x16c   :  { %407 = vbcast.lane.b32.xlu1 %v405_v14, 256 }
 0x170   :  { %418 = vbcast.lane.b32.xlu1 %v416_v16, 256 }
 0x1ce   :  { %v252_v17 = vpop.xlane.xlu0 %251 }
 0x1cf   :  { %v287_v33 = vrot.slane %v252_v17, %v1011_v26 }
 0x1d0   :  { %v258_v19 = vpop.xlane.xlu1 %257 }
 0x1d1   :  { %v298_v29 = vrot.slane %v258_v19, %v1011_v26 }
 0x1d2   :  { %v255_v22 = vpop.xlane.xlu0 %254 }
 0x1d3   :  { %v292_v30 = vrot.slane %v255_v22, %v1008_v24 }
 0x1d4   :  { %v261_v23 = vpop.xlane.xlu1 %260 }
 0x1d5   :  { %v302_v27 = vrot.slane %v261_v23, %v1008_v24  ;;  %v294_v36 = vsel %vm293_vm2, %v292_v30, %v287_v33 }
 0x1d6   :  { %v264_v25 = vpop.xlane.xlu0 %263 }
 0x1d7   :  { %v307_v31 = vrot.slane %v264_v25, %v1011_v26  ;;  %v303_v34 = vsel %vm293_vm2, %v302_v27, %v298_v29 }
 0x1d8   :  { %v267_v28 = vpop.xlane.xlu1 %266  ;;  %v323_v39 = vsel %vm322_vm3, %v303_v34, %v294_v36 }
 0x1d9   :  { %v311_v11 = vrot.slane %v267_v28, %v1008_v24 }
 0x1da   :  { %v270_v32 = vpop.xlane.xlu0 %269 }
 0x1db   :  { %v312_v35 = vsel %vm293_vm2, %v311_v11, %v307_v31  ;;  %v316_v37 = vrot.slane %v270_v32, %v1011_v26 }
 0x1dc   :  { %v273_v13 = vpop.xlane.xlu1 %272  ;;  %v325_v41 = vsel %vm324_vm4, %v312_v35, %v323_v39 }
 0x1dd   :  { %v320_v38 = vrot.slane %v273_v13, %v1008_v24 }
 0x1de   :  { %v390_v45 = vpop.permute.xlu0 %389 }
 0x1df   :  { %v321_v40 = vsel %vm293_vm2, %v320_v38, %v316_v37 }
 0x1e0   :  { %v327_v42 = vsel %vm326_vm5, %v321_v40, %v325_v41  ;;  %v386_v47 = vpop.permute.xlu1 %385 }
 0x1e1   :  { %v330_v43 = vsel %vm329_vm6, %v327_v42, -inf }
 0x1e2   :  { %331 = vmax.xlane.f32.xlu0 %v330_v43 }
 0x1e4   :  { %v397_v61 = vpop.permute.xlu1 %396 }
 0x1e8   :  { %v401_v2 = vpop.permute.xlu1 %400 }
 0x1ec   :  { %v408_v10 = vpop.permute.xlu1 %407 }
 0x1f8   :  { %411 = vbcast.lane.b32.xlu0 %v405_v14, 264 }
 0x1fc   :  { %422 = vbcast.lane.b32.xlu0 %v416_v16, 264 }
 0x26f   :  { %v332_v46 = vpop.xlane.xlu0 %331 }
 0x270   :  { %v337_v48 = vrot.slane %v332_v46, %v973_v20  ;;  %v341_v49 = vrot.slane %v332_v46, %v995_v9  ;;  %v345_v50 = vrot.slane %v332_v46, %v999_v12  ;;  %v349_v51 = vrot.slane %v332_v46, %v1003_v15 }
 0x272   :  { %v354_v52 = vsub.f32 %v252_v17, %v337_v48  ;;  %v355_v53 = vsub.f32 %v255_v22, %v337_v48  ;;  %v356_v54 = vsub.f32 %v258_v19, %v341_v49  ;;  %v358_v55 = vsub.f32 %v264_v25, %v345_v50 }
 0x273   :  { %v357_v56 = vsub.f32 %v261_v23, %v341_v49  ;;  %v360_v60 = vsub.f32 %v270_v32, %v349_v51  ;;  %v359_v63 = vsub.f32 %v267_v28, %v345_v50  ;;  %v361_v3 = vsub.f32 %v273_v13, %v349_v51  ;;  %v419_v23 = vpop.permute.xlu1 %418  ;;  %v412_v25 = vpop.permute.xlu0 %411 }
 0x274   :  { %v362_v57 = vmul.f32 1.442695, %v354_v52  ;;  %v364_v58 = vmul.f32 1.442695, %v355_v53  ;;  %v366_v59 = vmul.f32 1.442695, %v356_v54 }
 0x275   :  { %v370_v62 = vmul.f32 1.442695, %v358_v55  ;;  %v368_v0 = vmul.f32 1.442695, %v357_v56  ;;  %v374_v1 = vmul.f32 1.442695, %v360_v60 }
 0x276   :  { %719 = vpow2.f32 %v362_v57  ;;  %v372_v4 = vmul.f32 1.442695, %v359_v63  ;;  %v376_v6 = vmul.f32 1.442695, %v361_v3  ;;  %v546_v3 = vld [vmem:[#allocation7 + $0x8] sm:$0xff] }
 0x277   :  { %721 = vpow2.f32 %v364_v58  ;;  %v423_v31 = vpop.permute.xlu0 %422 }
 0x278   :  { %723 = vpow2.f32 %v366_v59 }
 0x279   :  { %725 = vpow2.f32 %v370_v62 }
 0x27a   :  { %727 = vpow2.f32 %v368_v0 }
 0x27b   :  { %729 = vpow2.f32 %v374_v1 }
 0x27c   :  { %731 = vpow2.f32 %v372_v4 }
 0x27d   :  { %733 = vpow2.f32 %v376_v6 }
 0x280   :  { %v720_v5 = vpop.eup %719 }
 0x281   :  { %v722_v7 = vpop.eup %721  ;;  %v432_v8 = vmul.f32 %v720_v5, %v386_v47  ;;  %v545_v5 = vld [vmem:[#allocation7] sm:$0xff] }
 0x282   :  { %v724_v14 = vpop.eup %723  ;;  %v433_v16 = vmul.f32 %v722_v7, %v390_v45  ;;  %v547_v7 = vld [vmem:[#allocation7 + $0x10] sm:$0xff] }
 0x283   :  { %449 = vperm.xlu1 %701, %v432_v8   ;;  %v726_v17 = vpop.eup %725  ;;  %v434_v18 = vmul.f32 %v724_v14, %v397_v61 }
 0x284   :  { %452 = vperm.xlu0 %702, %v433_v16   ;;  %v728_v19 = vpop.eup %727  ;;  %v436_v21 = vmul.f32 %v726_v17, %v408_v10  ;;  %v548_v10 = vld [vmem:[#allocation7 + $0x18] sm:$0xff] }
 0x285   :  { %v730_v22 = vpop.eup %729  ;;  %v435_v27 = vmul.f32 %v728_v19, %v401_v2 }
 0x286   :  { %v732_v28 = vpop.eup %731  ;;  %v438_v29 = vmul.f32 %v730_v22, %v419_v23 }
 0x287   :  { %455 = vperm.xlu1 %701, %v434_v18   ;;  %v437_v30 = vmul.f32 %v732_v28, %v412_v25  ;;  %v734_v11 = vpop.eup %733  ;;  %v549_v25 = vld [vmem:[#allocation7 + $0x20] sm:$0xff] }
 0x288   :  { %461 = vperm.xlu0 %702, %v436_v21   ;;  %v439_v32 = vmul.f32 %v734_v11, %v423_v31  ;;  %v552_v31 = vld [vmem:[#allocation7 + $0x38] sm:$0xff] }
 0x28b   :  { %458 = vperm.xlu1 %701, %v435_v27  }
 0x28c   :  { %467 = vperm.xlu0 %702, %v438_v29  }
 0x28f   :  { %464 = vperm.xlu1 %701, %v437_v30  }
 0x293   :  { %470 = vperm.xlu1 %701, %v439_v32  }
 0x302   :  { %v450_v33 = vpop.permute.xlu1 %449 }
 0x303   :  { %v453_v34 = vpop.permute.xlu0 %452  ;;  %v475_v39 = vrot.slane %v450_v33, %v1011_v26 }
 0x304   :  { %v479_v40 = vrot.slane %v453_v34, %v1008_v24 }
 0x306   :  { %v456_v13 = vpop.permute.xlu1 %455  ;;  %v480_v48 = vsel %vm293_vm2, %v479_v40, %v475_v39 }
 0x307   :  { %v462_v35 = vpop.permute.xlu0 %461  ;;  %v484_v41 = vrot.slane %v456_v13, %v1011_v26 }
 0x308   :  { %v493_v43 = vrot.slane %v462_v35, %v1011_v26 }
 0x30a   :  { %v459_v36 = vpop.permute.xlu1 %458 }
 0x30b   :  { %v488_v37 = vrot.slane %v459_v36, %v1008_v24  ;;  %v468_v44 = vpop.permute.xlu0 %467  ;;  %v551_v36 = vld [vmem:[#allocation7 + $0x30] sm:$0xff] }
 0x30c   :  { %v502_v49 = vrot.slane %v468_v44, %v1011_v26 }
 0x30d   :  { %v489_v45 = vsel %vm293_vm2, %v488_v37, %v484_v41 }
 0x30e   :  { %v465_v38 = vpop.permute.xlu1 %464  ;;  %v508_v51 = vsel %vm322_vm3, %v489_v45, %v480_v48 }
 0x30f   :  { %v497_v42 = vrot.slane %v465_v38, %v1008_v24 }
 0x311   :  { %v498_v46 = vsel %vm293_vm2, %v497_v42, %v493_v43 }
 0x312   :  { %v471_v47 = vpop.permute.xlu1 %470  ;;  %v509_v53 = vsel %vm324_vm4, %v498_v46, %v508_v51 }
 0x313   :  { %v506_v50 = vrot.slane %v471_v47, %v1008_v24 }
 0x315   :  { %v507_v52 = vsel %vm293_vm2, %v506_v50, %v502_v49 }
 0x316   :  { %v510_v54 = vsel %vm326_vm5, %v507_v52, %v509_v53 }
 0x317   :  { %v512_v55 = vsel %vm329_vm6, %v510_v54, 0.0 }
 0x318   :  { %513 = vadd.xlane.f32.xlu0 %v512_v55 }
 0x3a5   :  { %v514_v56 = vpop.xlane.xlu0 %513 }
 0x3a6   :  { %735 = vrcp.f32 %v514_v56 }
 0x3b0   :  { %v736_v57 = vpop.eup %735 }
 0x3b1   :  { %v532_v58 = vrot.slane %v736_v57, %v1003_v15  ;;  %v520_v26 = vrot.slane %v736_v57, %v973_v20  ;;  %v524_v61 = vrot.slane %v736_v57, %v995_v9  ;;  %v528_v0 = vrot.slane %v736_v57, %v999_v12 }
 0x3b3   :  { %v544_v59 = vmul.f32 %v532_v58, %v439_v32  ;;  %v537_v24 = vmul.f32 %v520_v26, %v432_v8  ;;  %v538_v60 = vmul.f32 %v520_v26, %v433_v16  ;;  %v539_v62 = vmul.f32 %v524_v61, %v434_v18 }
 0x3b4   :  { %v540_v63 = vmul.f32 %v524_v61, %v435_v27  ;;  %v541_v1 = vmul.f32 %v528_v0, %v436_v21  ;;  %v542_v2 = vmul.f32 %v528_v0, %v437_v30  ;;  %v543_v15 = vmul.f32 %v532_v58, %v438_v29  ;;  %v550_v30 = vld [vmem:[#allocation7 + $0x28] sm:$0xff] }
 0x3b5   :  { %590 = vperm.xlu0 %702, %v544_v59   ;;  %555 = vperm.xlu1 %701, %v537_v24  }
 0x3b9   :  { %560 = vperm.xlu1 %701, %v538_v60  }
 0x3bd   :  { %565 = vperm.xlu1 %701, %v539_v62  }
 0x3c1   :  { %570 = vperm.xlu1 %701, %v540_v63  }
 0x3c5   :  { %575 = vperm.xlu1 %701, %v541_v1  }
 0x3c9   :  { %580 = vperm.xlu1 %701, %v542_v2  }
 0x3cd   :  { %585 = vperm.xlu1 %701, %v543_v15  }
 0x434   :  { %v556_v20 = vpop.permute.xlu1 %555  ;;  %v591_v32 = vpop.permute.xlu0 %590 }
 0x435   :  { %v593_v8 = vmul.f32 %v556_v20, %v545_v5  ;;  %v600_v37 = vmul.f32 %v591_v32, %v552_v31 }
 0x437   :  { %v601_v17 = vsel %vm92_vm1, %v593_v8, 0.0  ;;  %v629_v46 = vsel %vm92_vm1, %v600_v37, 0.0 }
 0x438   :  { %v561_v4 = vpop.permute.xlu1 %560 }
 0x439   :  { %v594_v6 = vmul.f32 %v561_v4, %v546_v3 }
 0x43b   :  { %v602_v14 = vsel %vm92_vm1, %v594_v6, 0.0 }
 0x43c   :  { %v566_v9 = vpop.permute.xlu1 %565  ;;  %v603_v19 = vadd.f32 %v602_v14, %v601_v17 }
 0x43d   :  { %v595_v16 = vmul.f32 %v566_v9, %v547_v7 }
 0x43e   :  { %v604_v28 = vrot.slane %v603_v19, 4 }
 0x43f   :  { %v610_v21 = vsel %vm92_vm1, %v595_v16, 0.0 }
 0x440   :  { %v571_v12 = vpop.permute.xlu1 %570  ;;  %v605_v35 = vadd.f32 %v604_v28, %v603_v19 }
 0x441   :  { %v596_v18 = vmul.f32 %v571_v12, %v548_v10 }
 0x442   :  { %v606_v44 = vrot.slane %v605_v35, 2 }
 0x443   :  { %v611_v22 = vsel %vm92_vm1, %v596_v18, 0.0 }
 0x444   :  { %v612_v23 = vadd.f32 %v611_v22, %v610_v21  ;;  %v576_v27 = vpop.permute.xlu1 %575  ;;  %v607_v51 = vadd.f32 %v606_v44, %v605_v35 }
 0x445   :  { %v597_v11 = vmul.f32 %v576_v27, %v549_v25 }
 0x446   :  { %v613_v29 = vrot.slane %v612_v23, 4  ;;  %v608_v57 = vrot.slane %v607_v51, 1 }
 0x447   :  { %v619_v38 = vsel %vm92_vm1, %v597_v11, 0.0 }
 0x448   :  { %v614_v33 = vadd.f32 %v613_v29, %v612_v23  ;;  %v581_v34 = vpop.permute.xlu1 %580  ;;  %v609_v61 = vadd.f32 %v608_v57, %v607_v51 }
 0x449   :  { %v598_v13 = vmul.f32 %v581_v34, %v550_v30 }
 0x44a   :  { %v615_v40 = vrot.slane %v614_v33, 2 }
 0x44b   :  { %v620_v39 = vsel %vm92_vm1, %v598_v13, 0.0 }
 0x44c   :  { %v621_v41 = vadd.f32 %v620_v39, %v619_v38  ;;  %v586_v42 = vpop.permute.xlu1 %585  ;;  %v616_v48 = vadd.f32 %v615_v40, %v614_v33 }
 0x44d   :  { %v599_v43 = vmul.f32 %v586_v42, %v551_v36 }
 0x44e   :  { %v622_v45 = vrot.slane %v621_v41, 4  ;;  %v617_v54 = vrot.slane %v616_v48, 1 }
 0x44f   :  { %v628_v47 = vsel %vm92_vm1, %v599_v43, 0.0 }
 0x450   :  { %v623_v49 = vadd.f32 %v622_v45, %v621_v41  ;;  %v630_v50 = vadd.f32 %v629_v46, %v628_v47  ;;  %v618_v59 = vadd.f32 %v617_v54, %v616_v48 }
 0x452   :  { %v624_v52 = vrot.slane %v623_v49, 2  ;;  %v631_v53 = vrot.slane %v630_v50, 4  ;;  %v641_v0 = vsel %vm322_vm3, %v618_v59, %v609_v61 }
 0x454   :  { %v625_v55 = vadd.f32 %v624_v52, %v623_v49  ;;  %v632_v56 = vadd.f32 %v631_v53, %v630_v50 }
 0x456   :  { %v626_v58 = vrot.slane %v625_v55, 1  ;;  %v633_v26 = vrot.slane %v632_v56, 2 }
 0x458   :  { %v634_v24 = vadd.f32 %v633_v26, %v632_v56  ;;  %v627_v60 = vadd.f32 %v626_v58, %v625_v55 }
 0x45a   :  { %v635_v62 = vrot.slane %v634_v24, 1  ;;  %v642_v1 = vsel %vm324_vm4, %v627_v60, %v641_v0 }
 0x45c   :  { %v636_v63 = vadd.f32 %v635_v62, %v634_v24 }
 0x45e   :  { %v643_v2 = vsel %vm326_vm5, %v636_v63, %v642_v1 }
 0x45f   :  { %646 = vst.msk [vmem:[#allocation10] sm:$0xf] %vm645_vm7, %v643_v2 }
 0x460   :  { %836 = shalt.err (!%p833_p8)
}
 0x461   :  { %s837_s8 = scalar_lea.hbm %s1083_s7, 64 }
 0x462   :  { %p838_p9 = scmp.ne.s32.totalorder %s1083_s7, %s837_s8  ;;  %p841_p10 = scmp.lt.u32.totalorder %s837_s8, %s1083_s7 }
 0x464   :  { %p843_p11 = pnand %p841_p10, %p838_p9 }
 0x466   :  { %846 = shalt.err (!%p843_p11)
}
 0x467   :  { %656 = dma.vmem_to_hbm [thread:$0]  %s654_s27, 64, %s1083_s7, [#allocation4]  }
 0x468   :  { %853 = dma.done.wait [#allocation4], 64  }
 0x469   :  { %854 = vsyncadd [#allocation4], 4294967232 }
 0x46a   :  { %660 = vsyncpa [#allocation3], 1 }
 0x46b   :  { %661 = vsyncpa [#allocation6], 1 }
 0x46c   :  { %662 = vsyncpa [#allocation9], 1 }
 0x46d   :  { %663 = vsyncpa [#allocation4], 1 }

</bundles_post_ra>
